<compile_context>
chip_gen: v6e
topology: v6e:2x2x1
jax: 0.10.0
libtpu: 0.0.40
codegen_flags: <defaults>
</compile_context>

<pallas_src>
import functools
import math

import jax
import jax.numpy as jnp
from jax.experimental import pallas as pl
from jax.experimental.pallas import tpu as pltpu

LEAKY_SLOPE = 0.02       # nn.LeakyReLU(0.02)
CP1 = 16                 # conv1 padded output channels
CP = 8                   # conv2..conv5 padded output channels (real: 8,4,2,1)
NEG_BIG = -1.0e30        # additive prefix-max mask (finite -> no 0*inf NaNs)


# --------------------------------------------------------------------------- #
# pltpu.roll direction probe: True iff pltpu.roll follows np.roll semantics
# (out[i] = in[i - shift]).  Resolved once per backend at SETUP time (not in
# the per-call serving path), cached keyed on jax.default_backend(); the main
# kernel adapts to either convention so a wrong guess can never silently
# corrupt results.
# --------------------------------------------------------------------------- #
_ROLL_PROBE_CACHE = {}


def _pltpu_roll_matches_numpy():
    backend = jax.default_backend()
    if backend not in _ROLL_PROBE_CACHE:
        def probe(x_ref, o_ref):
            o_ref[...] = pltpu.roll(x_ref[...], 1, axis=1)

        x = jnp.arange(8 * 128, dtype=jnp.float32).reshape(8, 128)
        y = pl.pallas_call(
            probe, out_shape=jax.ShapeDtypeStruct((8, 128), jnp.float32))(x)
        _ROLL_PROBE_CACHE[backend] = bool(y[0, 1] == x[0, 0])
    return _ROLL_PROBE_CACHE[backend]


def _choose_batch_tile(L, B, lane_target):
    """Batch elements per grid step.

    TB*L must be a multiple of 128 (lane alignment); grow toward `lane_target`
    lanes, but cap at base*ceil(B/(2*base)) so the parallel grid axis keeps at
    least two steps whenever the batch allows it (v7x megacore split).
    """
    base = math.lcm(L, 128) // L
    cap = base * max(1, -(-B // (2 * base)))
    tb = base
    while tb * L < lane_target and tb + base <= cap:
        tb += base
    return tb


# --------------------------------------------------------------------------- #
# Kernel: one grid step = TB batch elements, activations are (C, N = TB*L),
# channels on sublanes, batch x filter flattened onto lanes.
# --------------------------------------------------------------------------- #
def _filter_weight_kernel(x_ref, w1_ref, b1_ref, w2_ref, b2_ref, wr_ref, br_ref,
                          coef_ref, wrapm_ref, fcb_ref, nf_ref, nl_ref,
                          pmask_ref, lastm_ref, segsum_ref, segbcast_ref,
                          out_ref, *, L, roll_np):
    N = x_ref.shape[-1]

    def nroll(v, k):
        # np.roll semantics along lanes: out[..., i] = v[..., (i - k) % N]
        k = k % N
        if k == 0:
            return v
        return pltpu.roll(v, k if roll_np else N - k, axis=1)

    not_first = nf_ref[...]                     # (1, N): 0 where pos == 0
    not_last = nl_ref[...]                      # (1, N): 0 where pos == L-1

    def conv_lrelu(h, w_all, bias):
        # w_all: (3*CPo, Cin) with the 3 taps stacked on the output axis, so a
        # single MXU matmul covers all taps; the +/-1 taps are realigned with
        # lane rolls + boundary masks (zero padding of Conv1d k=3, p=1).
        cpo = w_all.shape[0] // 3
        g = jnp.dot(w_all, h, preferred_element_type=jnp.float32)     # (3*CPo, N)
        y = (nroll(g[0:cpo, :], 1) * not_first              # tap applied at l-1
             + g[cpo:2 * cpo, :]                            # tap applied at l
             + nroll(g[2 * cpo:3 * cpo, :], -1) * not_last  # tap applied at l+1
             + bias)
        return jnp.where(y > 0, y, LEAKY_SLOPE * y)          # LeakyReLU(0.02)

    h = conv_lrelu(x_ref[...], w1_ref[...], b1_ref[...])     # (16, N)  conv1
    h = conv_lrelu(h, w2_ref[...], b2_ref[...])              # (8, N)   conv2
    for i in range(wr_ref.shape[0]):                         # conv3..conv5
        h = conv_lrelu(h, wr_ref[i], br_ref[i])              # (8, N), pad rows stay 0

    h0 = h[0:1, :]        # conv5 output channel (rows 1..7 are zero padding)

    # ---- fc over the filter axis, O(N*L): one lane roll per offset d. -------
    # z[p] = fc_b[pos] + sum_d coef[d, p] * h0[segment-rolled by d](p);
    # the segment roll is one fused select against hL (previous-segment copy)
    # followed by one circular lane roll.
    hL = nroll(h0, L)
    diff = h0 - hL
    z = fcb_ref[...] + coef_ref[0] * h0
    for d in range(1, L):
        src = hL + wrapm_ref[d] * diff           # == h0 where pos >= d, else hL
        z = z + coef_ref[d] * nroll(src, -d)

    # ---- segment max: masked prefix max (1 roll / step) + MXU broadcast. ----
    m = z
    k = 1
    s = 0
    while k < L:
        m = jnp.maximum(m, nroll(m, k) + pmask_ref[s])       # -1e30 where pos < k
        k *= 2
        s += 1
    m_last = m * lastm_ref[...]                               # keep pos == L-1 lanes
    seg_m = jnp.dot(m_last, segsum_ref[...], preferred_element_type=jnp.float32)   # (1, TB)
    max_b = jnp.dot(seg_m, segbcast_ref[...], preferred_element_type=jnp.float32)  # (1, N)

    # ---- softmax (exact division; approx reciprocal would break 1e-5). ------
    e = jnp.exp(z - max_b)
    seg_s = jnp.dot(e, segsum_ref[...], preferred_element_type=jnp.float32)        # (1, TB)
    denom = jnp.dot(seg_s, segbcast_ref[...], preferred_element_type=jnp.float32)  # (1, N)
    out_ref[0] = (e / denom).astype(out_ref.dtype)


# --------------------------------------------------------------------------- #
# One-time setup + jitted forward
# --------------------------------------------------------------------------- #
def make_filter_weight_fn(conv_params, fc_params, batch_size, *, lane_target=1024):
    """Packs all constants once and returns a jitted forward:
       pf (B, 32, filter_size) f32  ->  softmax filter weights (B, filter_size)."""
    fc_w, fc_b = fc_params
    L = int(fc_w.shape[0])
    Cin = int(conv_params[0][0].shape[1])                     # 32

    TB = _choose_batch_tile(L, batch_size, lane_target)       # batch elems / step
    N = TB * L                                                # lanes / step (mult of 128)
    S = max(1, (L - 1).bit_length())                          # prefix-max doubling steps

    # --- conv weights: (Cout, Cin, 3) -> (3*CPo, Cin_pad); taps stacked on out axis.
    def pack_conv(w, b, cout_pad, cin_pad):
        cout, cin, _ = w.shape
        wp = jnp.zeros((3, cout_pad, cin_pad), jnp.float32)
        wp = wp.at[:, :cout, :cin].set(jnp.transpose(w, (2, 0, 1)).astype(jnp.float32))
        bp = jnp.zeros((cout_pad, 1), jnp.float32).at[:cout, 0].set(b.astype(jnp.float32))
        return wp.reshape(3 * cout_pad, cin_pad), bp

    w1, b1 = pack_conv(*conv_params[0], cout_pad=CP1, cin_pad=Cin)   # (48, 32), (16, 1)
    w2, b2 = pack_conv(*conv_params[1], cout_pad=CP, cin_pad=CP1)    # (24, 16), (8, 1)
    rest = [pack_conv(w, b, cout_pad=CP, cin_pad=CP) for (w, b) in conv_params[2:]]
    wr = jnp.stack([w for w, _ in rest])                             # (3, 24, 8)
    br = jnp.stack([b for _, b in rest])                             # (3, 8, 1)

    # --- per-lane constants in the flattened (batch x filter) lane layout.
    pos = jnp.arange(N, dtype=jnp.int32) % L                         # (N,)
    dvec = jnp.arange(L, dtype=jnp.int32)[:, None]                   # (L, 1)
    coef = fc_w.astype(jnp.float32)[pos[None, :], (pos[None, :] + dvec) % L]
    coef = coef.reshape(L, 1, N)                                     # coef[d,p]=W[pos,(pos+d)%L]
    wrapm = (pos[None, :] >= dvec).astype(jnp.float32).reshape(L, 1, N)
    fcb = fc_b.astype(jnp.float32)[pos].reshape(1, N)
    nf = (pos != 0).astype(jnp.float32).reshape(1, N)
    nl = (pos != L - 1).astype(jnp.float32).reshape(1, N)
    lastm = (pos == L - 1).astype(jnp.float32).reshape(1, N)
    pmask = jnp.stack([jnp.where(pos >= (1 << s), 0.0, NEG_BIG) for s in range(S)])
    pmask = pmask.astype(jnp.float32).reshape(S, 1, N)
    segsum = jnp.kron(jnp.eye(TB, dtype=jnp.float32),
                      jnp.ones((L, 1), jnp.float32))                 # (N, TB)
    segbcast = segsum.T                                              # (TB, N)

    roll_np = _pltpu_roll_matches_numpy()
    kernel = functools.partial(_filter_weight_kernel, L=L, roll_np=roll_np)

    # Explicit scoped-VMEM budget (v5e default is only 16 MiB); everything here
    # is small now that the N^2 fc weight is gone, so 16..32 MiB is ample.
    const_bytes = 4 * sum(int(a.size) for a in
                          (w1, b1, w2, b2, wr, br, coef, wrapm, fcb, nf, nl,
                           pmask, lastm, segsum, segbcast))
    block_bytes = 4 * (Cin * N + N) + const_bytes
    vmem_limit = int(min(32 << 20, max(16 << 20, 4 * block_bytes)))

    def forward(pf):
        B, cin, ell = pf.shape
        assert cin == Cin and ell == L, "input must be (B, 32, filter_size)"
        G = -(-B // TB)                                   # grid steps
        Bp = G * TB
        # Activations: (B, 32, L) -> (32, Bp*L); batch x filter flattened on lanes.
        # (A producer that already emits channel-major data can skip this
        # transpose, which costs one extra HBM round trip of the tiny input.)
        x = jnp.transpose(pf.astype(jnp.float32), (1, 0, 2))
        x = jnp.pad(x, ((0, 0), (0, Bp - B), (0, 0))).reshape(Cin, Bp * L)

        out = pl.pallas_call(
            kernel,
            out_shape=jax.ShapeDtypeStruct((G, 1, N), jnp.float32),
            grid_spec=pltpu.PrefetchScalarGridSpec(
                num_scalar_prefetch=0,
                grid=(G,),
                in_specs=[
                    pl.BlockSpec((Cin, N), lambda i: (0, i)),      # activations
                    pl.BlockSpec(w1.shape, lambda i: (0, 0)),
                    pl.BlockSpec(b1.shape, lambda i: (0, 0)),
                    pl.BlockSpec(w2.shape, lambda i: (0, 0)),
                    pl.BlockSpec(b2.shape, lambda i: (0, 0)),
                    pl.BlockSpec(wr.shape, lambda i: (0, 0, 0)),
                    pl.BlockSpec(br.shape, lambda i: (0, 0, 0)),
                    pl.BlockSpec(coef.shape, lambda i: (0, 0, 0)),
                    pl.BlockSpec(wrapm.shape, lambda i: (0, 0, 0)),
                    pl.BlockSpec(fcb.shape, lambda i: (0, 0)),
                    pl.BlockSpec(nf.shape, lambda i: (0, 0)),
                    pl.BlockSpec(nl.shape, lambda i: (0, 0)),
                    pl.BlockSpec(pmask.shape, lambda i: (0, 0, 0)),
                    pl.BlockSpec(lastm.shape, lambda i: (0, 0)),
                    pl.BlockSpec(segsum.shape, lambda i: (0, 0)),
                    pl.BlockSpec(segbcast.shape, lambda i: (0, 0)),
                ],
                out_specs=pl.BlockSpec((1, 1, N), lambda i: (i, 0, 0)),
            ),
            compiler_params=pltpu.CompilerParams(
                dimension_semantics=("parallel",),
                vmem_limit_bytes=vmem_limit),
        )(x, w1, b1, w2, b2, wr, br, coef, wrapm, fcb, nf, nl,
          pmask, lastm, segsum, segbcast)

        return out.reshape(Bp, L)[:B]      # lane-dense store, reshape outside

    return jax.jit(forward)


# --------------------------------------------------------------------------- #
# Parameters + pure-JAX reference
# --------------------------------------------------------------------------- #
def init_params(key, filter_size):
    """Deterministic synthetic parameters matching the module's shapes."""
    conv_shapes = [(16, 32), (8, 16), (4, 8), (2, 4), (1, 2)]
    keys = jax.random.split(key, 2 * len(conv_shapes) + 2)
    convs = []
    for i, (cout, cin) in enumerate(conv_shapes):
        bound = 1.0 / jnp.sqrt(cin * 3.0)
        w = jax.random.uniform(keys[2 * i], (cout, cin, 3), jnp.float32, -bound, bound)
        b = jax.random.uniform(keys[2 * i + 1], (cout,), jnp.float32, -bound, bound)
        convs.append((w, b))
    bound = 1.0 / jnp.sqrt(float(filter_size))
    fc_w = jax.random.uniform(keys[-2], (filter_size, filter_size), jnp.float32, -bound, bound)
    fc_b = jax.random.uniform(keys[-1], (filter_size,), jnp.float32, -bound, bound)
    return convs, (fc_w, fc_b)


def reference_forward(pf, conv_params, fc_params):
    """Plain-JAX reference of the PyTorch forward pass."""
    h = pf
    for w, b in conv_params:
        L = h.shape[2]
        hp = jnp.pad(h, ((0, 0), (0, 0), (1, 1)))
        y = sum(jnp.einsum('oc,bcl->bol', w[:, :, k], hp[:, :, k:k + L])
                for k in range(3)) + b[None, :, None]
        h = jnp.where(y > 0, y, LEAKY_SLOPE * y)
    h = h[:, 0, :]                                   # squeeze (B, 1, L) -> (B, L)
    fc_w, fc_b = fc_params
    z = h @ fc_w.T + fc_b
    return jax.nn.softmax(z, axis=1)


if __name__ == "__main__":
    B, CIN, FILTER_SIZE = 2, 32, 16
    key = jax.random.PRNGKey(0)
    k_x, k_p = jax.random.split(key)
    pf = jax.random.normal(k_x, (B, CIN, FILTER_SIZE), jnp.float32)
    conv_params, fc_params = init_params(k_p, FILTER_SIZE)

    fwd = make_filter_weight_fn(conv_params, fc_params, batch_size=B)
    out = jax.block_until_ready(fwd(pf))

    ref = reference_forward(pf, conv_params, fc_params)
    assert out.shape == (B, FILTER_SIZE)
    err = float(jnp.max(jnp.abs(out - ref)))
    assert jnp.allclose(out, ref, atol=1e-5, rtol=1e-5), err
    print("KERNEL_OK")
</pallas_src>

<mosaic_0001>
module attributes {stable_mosaic.version = 11 : i64} {
  func.func @probe(%arg0: memref<8x128xf32, #tpu.memory_space<vmem>>, %arg1: memref<8x128xf32, #tpu.memory_space<vmem>>) attributes {dimension_semantics = [], scalar_prefetch = 0 : i64, scratch_operands = 0 : i64, tpu.core_type = #tpu.core_type<tc>} {
    %c0 = arith.constant 0 : index
    %c0_0 = arith.constant 0 : index
    %0 = vector.load %arg0[%c0, %c0_0] : memref<8x128xf32, #tpu.memory_space<vmem>>, vector<8x128xf32>
    %c1_i32 = arith.constant 1 : i32
    %1 = tpu.dynamic_rotate %0 by %c1_i32 dim 1 : vector<8x128xf32>, i32 -> vector<8x128xf32>
    %c0_1 = arith.constant 0 : index
    %c0_2 = arith.constant 0 : index
    %2 = vector.load %arg1[%c0_1, %c0_2] : memref<8x128xf32, #tpu.memory_space<vmem>>, vector<8x128xf32>
    tpu.vector_store %arg1[%c0_1, %c0_2], %1 {strides = array<i32>} : memref<8x128xf32, #tpu.memory_space<vmem>>, vector<8x128xf32>,
    return
  }
}

</mosaic_0001>

<bundles_post_ra>
// kernel: tpu_custom_call.1
= control target key start
LH: loop header
LB: loop body
LE: loop exit
PB: predicated region body
PF: predicated region fallthrough
CT: control target
= control target key end

     0   :  { %6 = vsyncpa [#allocation3], 0  ;;  %s106_s0 = inlined_call_operand.hbm [shape: f32[8,128], index: 0, kind: input, shape index: {}]   ;;  %s107_s1 = inlined_call_operand.hbm [shape: f32[8,128], index: 1, kind: output, shape index: {}]  }
   0x1   :  { %7 = vsyncpa [#allocation4], 0  ;;  %s87_s6 = smov [#allocation2]  }
   0x2   :  { %s14_s7 = sshll.u32 %s87_s6, 4  ;;  %s15_s7 = int_to_ptr.vmem [resolvable:$true] %s14_s7 }
   0x3   :  { %s51_s8 = scalar_lea.vmem %s15_s7, 128  ;;  %p56_p1 = scmp.lt.s32.totalorder %s15_s7, %s15_s7 }
   0x4   :  { %p52_p0 = scmp.ne.s32.totalorder %s15_s7, %s51_s8  ;;  %p57_p2 = scmp.lt.s32.totalorder %s51_s8, %s51_s8 }
   0x6   :  { %p58_p3 = por %p57_p2, %p56_p1 }
   0x8   :  { %p59_p4 = pnand %p58_p3, %p52_p0 }
   0xa   :  { %62 = shalt.err (!%p59_p4)
}
   0xb   :  { %17 = dma.hbm_to_vmem [thread:$0]  %s106_s0, 128, %s15_s7, [#allocation3]  }
   0xc   :  { %83 = dma.done.wait [#allocation3], 128  }
   0xd   :  { %84 = vsyncadd [#allocation3], 4294967168  ;;  %v21_v0 = vld [vmem:[#allocation2] sm:$0xff]  ;;  %s88_s11 = smov 1   ;;  %s89_s12 = smov [#allocation5]  }
   0xe   :  { %22 = vrot.lane.b32.xlu0 %v21_v0, %s88_s11  ;;  %s31_s13 = sshll.u32 %s89_s12, 4  ;;  %s32_s13 = int_to_ptr.vmem [resolvable:$true] %s31_s13 }
   0xf   :  { %s63_s14 = scalar_lea.vmem %s32_s13, 128  ;;  %p68_p6 = scmp.lt.s32.totalorder %s32_s13, %s32_s13 }
  0x10   :  { %p64_p5 = scmp.ne.s32.totalorder %s32_s13, %s63_s14  ;;  %p69_p7 = scmp.lt.s32.totalorder %s63_s14, %s63_s14 }
  0x12   :  { %p70_p8 = por %p69_p7, %p68_p6 }
  0x14   :  { %p71_p9 = pnand %p70_p8, %p64_p5 }
  0x80   :  { %v23_v1 = vpop.permute.xlu0 %22 }
  0x81   :  { %24 = vst [vmem:[#allocation5] sm:$0xff] %v23_v1 }
  0x82   :  { %74 = shalt.err (!%p71_p9)
}
  0x83   :  { %34 = dma.vmem_to_hbm [thread:$0]  %s32_s13, 128, %s107_s1, [#allocation4]  }
  0x84   :  { %85 = dma.done.wait [#allocation4], 128  }
  0x85   :  { %86 = vsyncadd [#allocation4], 4294967168 }
  0x86   :  { %38 = vsyncpa [#allocation3], 1 }
  0x87   :  { %39 = vsyncpa [#allocation4], 1 }

</bundles_post_ra>
